<compile_context>
chip_gen: v5e
topology: v5e:2x2
jax: 0.10.0
libtpu: 0.0.40
codegen_flags: <defaults>
</compile_context>

<pallas_src>
import jax
import jax.numpy as jnp
from jax.experimental import pallas as pl
from jax.experimental.pallas import tpu as pltpu


# ----------------------------------------------------------------------------
# helpers
# ----------------------------------------------------------------------------
def _round_up(n, m):
    return ((n + m - 1) // m) * m


def _pick_tk(d_in_pad, tk_max):
    """Largest multiple of 128 that divides d_in_pad and is <= tk_max."""
    best = 128
    cap = min(d_in_pad, max(int(tk_max), 128))
    for cand in range(128, cap + 1, 128):
        if d_in_pad % cand == 0:
            best = cand
    return best


# ----------------------------------------------------------------------------
# title_encoder: fused 2-layer MLP, HBM-bandwidth-bound weight streaming
# ----------------------------------------------------------------------------
def title_mlp_kernel(x_ref, w1_ref, b1_ref, w2_ref, part_ref, h_acc):
    """One (hidden-half h, reduction-step k) grid point.

    Grid axis 0 ("parallel"): hidden-column half -> both v7x TensorCores.
    Grid axis 1 ("arbitrary"): D_in reduction; hidden activation stays
    resident in the f32 VMEM accumulator `h_acc`.
    """
    k = pl.program_id(1)

    @pl.when(k == 0)
    def _():
        # Seed the accumulator with the linear1 bias for this hidden half.
        h_acc[...] = jnp.broadcast_to(b1_ref[...], h_acc.shape)

    # Stream W1 in bf16 (bandwidth is the binding resource); f32 accumulation.
    h_acc[...] += jnp.dot(
        x_ref[...].astype(jnp.bfloat16), w1_ref[...],
        preferred_element_type=jnp.float32)

    @pl.when(k == pl.num_programs(1) - 1)
    def _():
        h = jnp.maximum(h_acc[...], 0.0).astype(jnp.bfloat16)   # relu(linear1)
        part_ref[0] = jnp.dot(
            h, w2_ref[...], preferred_element_type=jnp.float32
        ).astype(part_ref.dtype)                                 # partial linear2


def title_encoder_forward(x, w1, b1, w2, b2, *, tk_max=1024, n_split=2):
    """relu(relu(x @ w1.T + b1) @ w2.T + b2) with PyTorch-layout weights.

    x: (B, D_in) f32, w1: (D_hid, D_in), b1: (D_hid,), w2: (D_out, D_hid),
    b2: (D_out,).  Handles the real non-128-multiple sizes via zero padding.
    """
    B, D_in = x.shape
    D_hid = w1.shape[0]
    D_out = w2.shape[0]

    # --- pad to hardware-friendly sizes (zero padding is numerically exact) --
    Bp = _round_up(B, 8)
    Din_pad = _round_up(D_in, 128)                # 18415 -> 18432
    Dh_pad = _round_up(D_hid, 128 * n_split)      # 9208  -> 9216
    tk = _pick_tk(Din_pad, tk_max)
    Dh_half = Dh_pad // n_split
    K = Din_pad // tk

    x_p = jnp.zeros((Bp, Din_pad), jnp.float32).at[:B, :D_in].set(x)
    w1_p = jnp.zeros((Din_pad, Dh_pad), jnp.bfloat16).at[:D_in, :D_hid].set(
        w1.T.astype(jnp.bfloat16))
    b1_p = jnp.zeros((1, Dh_pad), jnp.float32).at[0, :D_hid].set(b1)
    w2_p = jnp.zeros((Dh_pad, D_out), jnp.bfloat16).at[:D_hid, :].set(
        w2.T.astype(jnp.bfloat16))

    # --- VMEM budget: double-buffered streams + residents + scratch ----------
    est = (2 * Bp * tk * 4            # x tiles (f32)
           + 2 * tk * Dh_half * 2     # w1 tiles (bf16)
           + 2 * Dh_half * 4          # b1 half (f32)
           + 2 * Dh_half * D_out * 2  # w2 half (bf16)
           + 2 * Bp * D_out * 4       # output partial
           + Bp * Dh_half * 4)        # h_acc scratch
    # Cap at 48 MiB so the pipeline keeps double-buffering on v7x (64 MiB VMEM);
    # well under the 128 MiB of v5e/v6e while still lifting their 16/32 MiB
    # default scoped limit.
    vmem_limit = int(min(max(2 * est, 16 * 1024 * 1024), 48 * 1024 * 1024))

    parts = pl.pallas_call(
        title_mlp_kernel,
        out_shape=jax.ShapeDtypeStruct((n_split, Bp, D_out), jnp.float32),
        grid_spec=pltpu.PrefetchScalarGridSpec(
            num_scalar_prefetch=0,
            grid=(n_split, K),
            in_specs=[
                pl.BlockSpec((Bp, tk), lambda h, k: (0, k)),          # x tile
                pl.BlockSpec((tk, Dh_half), lambda h, k: (k, h)),     # w1 tile (bf16)
                pl.BlockSpec((1, Dh_half), lambda h, k: (0, h)),      # b1 half
                pl.BlockSpec((Dh_half, D_out), lambda h, k: (h, 0)),  # w2 half (bf16)
            ],
            out_specs=pl.BlockSpec((1, Bp, D_out), lambda h, k: (h, 0, 0)),
            scratch_shapes=[pltpu.VMEM((Bp, Dh_half), jnp.float32)],
        ),
        compiler_params=pltpu.CompilerParams(
            dimension_semantics=("parallel", "arbitrary"),
            vmem_limit_bytes=vmem_limit,
        ),
    )(x_p, w1_p, b1_p, w2_p)

    # Combine the two hidden-half partials, add bias, final relu (tiny, B x 8).
    y = jnp.maximum(parts.sum(axis=0) + b2[None, :], 0.0)
    return y[:B]


# ----------------------------------------------------------------------------
# summary_encoder: GRU(100, 64) + Linear(64, 8) + ReLU, fused per time step
# ----------------------------------------------------------------------------
def gru_linear_kernel(x_ref, w_ih_ref, b_ih_ref, w_hh_ref, b_hh_ref,
                      wl_ref, bl_ref, o_ref, h_ref):
    t = pl.program_id(0)

    @pl.when(t == 0)
    def _():
        h_ref[...] = jnp.zeros_like(h_ref)      # h0 = 0 (PyTorch default)

    x_t = x_ref[0]          # (B, D_in)
    h_prev = h_ref[...]     # (B, H)

    def sig(v):
        return 1.0 / (1.0 + jnp.exp(-v))

    def gate(g):
        gi = jnp.dot(x_t, w_ih_ref[g], preferred_element_type=jnp.float32) + b_ih_ref[g]
        gh = jnp.dot(h_prev, w_hh_ref[g], preferred_element_type=jnp.float32) + b_hh_ref[g]
        return gi, gh

    gi_r, gh_r = gate(0)    # PyTorch gate order: r, z, n
    gi_z, gh_z = gate(1)
    gi_n, gh_n = gate(2)
    r = sig(gi_r + gh_r)
    z = sig(gi_z + gh_z)
    n = jnp.tanh(gi_n + r * gh_n)
    h_new = (1.0 - z) * n + z * h_prev
    h_ref[...] = h_new

    y = jnp.dot(h_new, wl_ref[...], preferred_element_type=jnp.float32) + bl_ref[...]
    o_ref[0] = jnp.maximum(y, 0.0).astype(o_ref.dtype)


def summary_encoder_forward(x, w_ih, b_ih, w_hh, b_hh, wl_t, bl):
    """x: (S, B, D_in); w_ih: (3, D_in, H); w_hh: (3, H, H); b_*: (3, 1, H);
       wl_t: (H, D_out); bl: (1, D_out)  ->  (S, B, D_out)."""
    S, B, D_in = x.shape
    H = w_hh.shape[-1]
    D_out = wl_t.shape[-1]
    return pl.pallas_call(
        gru_linear_kernel,
        out_shape=jax.ShapeDtypeStruct((S, B, D_out), jnp.float32),
        grid_spec=pltpu.PrefetchScalarGridSpec(
            num_scalar_prefetch=0,
            grid=(S,),
            in_specs=[
                pl.BlockSpec((1, B, D_in), lambda t: (t, 0, 0)),
                pl.BlockSpec((3, D_in, H), lambda t: (0, 0, 0)),
                pl.BlockSpec((3, 1, H), lambda t: (0, 0, 0)),
                pl.BlockSpec((3, H, H), lambda t: (0, 0, 0)),
                pl.BlockSpec((3, 1, H), lambda t: (0, 0, 0)),
                pl.BlockSpec((H, D_out), lambda t: (0, 0)),
                pl.BlockSpec((1, D_out), lambda t: (0, 0)),
            ],
            out_specs=pl.BlockSpec((1, B, D_out), lambda t: (t, 0, 0)),
            scratch_shapes=[pltpu.VMEM((B, H), jnp.float32)],
        ),
        compiler_params=pltpu.CompilerParams(
            dimension_semantics=("arbitrary",)),   # recurrent: sequential
    )(x, w_ih, b_ih, w_hh, b_hh, wl_t, bl)


# ----------------------------------------------------------------------------
# small fused linear (+ optional ReLU): genre_encoder and the final Linear
# ----------------------------------------------------------------------------
def linear_relu_forward(x, w_t, b, *, relu):
    """x: (B, D_in), w_t: (D_in, D_out), b: (1, D_out). Whole arrays in VMEM."""
    def kernel(x_ref, w_ref, b_ref, o_ref):
        y = jnp.dot(x_ref[...], w_ref[...], preferred_element_type=jnp.float32)
        y = y + b_ref[...]
        if relu:
            y = jnp.maximum(y, 0.0)
        o_ref[...] = y.astype(o_ref.dtype)

    B = x.shape[0]
    D_out = w_t.shape[1]
    return pl.pallas_call(
        kernel, out_shape=jax.ShapeDtypeStruct((B, D_out), jnp.float32)
    )(x, w_t, b)


# ----------------------------------------------------------------------------
# predictor forward (glue: reshapes / concat stay in JAX)
# ----------------------------------------------------------------------------
def predictor_forward(params, summaries, genres, titles, platforms, *, tk_max=1024):
    p = params
    B = genres.shape[0]
    H = p["gru_w_hh"].shape[1]

    # summary_encoder: GRU + Linear + ReLU (PyTorch weights -> stacked/transposed)
    w_ih_s = p["gru_w_ih"].reshape(3, H, -1).transpose(0, 2, 1)   # (3, 100, 64)
    w_hh_s = p["gru_w_hh"].reshape(3, H, H).transpose(0, 2, 1)    # (3, 64, 64)
    b_ih_s = p["gru_b_ih"].reshape(3, 1, H)
    b_hh_s = p["gru_b_hh"].reshape(3, 1, H)
    s = summary_encoder_forward(summaries, w_ih_s, b_ih_s, w_hh_s, b_hh_s,
                                p["sum_w"].T, p["sum_b"].reshape(1, -1))
    s = s.reshape(B, -1)                      # mirrors torch .view(batch_size, -1)

    g = linear_relu_forward(genres, p["gen_w"].T, p["gen_b"].reshape(1, -1), relu=True)

    t = title_encoder_forward(titles, p["tit_w1"], p["tit_b1"],
                              p["tit_w2"], p["tit_b2"], tk_max=tk_max)

    full = jnp.concatenate([s, g, t, platforms], axis=1)          # (B, 27)
    return linear_relu_forward(full, p["fin_w"].T, p["fin_b"].reshape(1, -1),
                               relu=False)


# ----------------------------------------------------------------------------
if __name__ == "__main__":
    B = 8            # batch
    SEQ = 1          # summary seq length (linear_input = SEQ*8 + 6 + 8 + 5 = 27)
    D_SUM_IN, D_GRU_H, D_SUM_OUT = 100, 64, 8
    D_GEN_IN, D_GEN_OUT = 222, 6
    # Scaled-down stand-ins for the real 18415 -> 9208 -> 8 title MLP; chosen
    # non-multiples of 128 to exercise the padding path used at real shapes.
    D_TIT_IN, D_TIT_HID, D_TIT_OUT = 500, 250, 8
    D_PLAT = 5
    OUT_SIZE = 1

    key = jax.random.PRNGKey(0)
    ks = jax.random.split(key, 18)
    sc = 0.02

    summaries = jax.random.normal(ks[0], (SEQ, B, D_SUM_IN), jnp.float32)
    genres    = jax.random.normal(ks[1], (B, D_GEN_IN), jnp.float32)
    titles    = jax.random.normal(ks[2], (B, D_TIT_IN), jnp.float32)
    platforms = jax.random.normal(ks[3], (B, D_PLAT), jnp.float32)

    p = {
        "gru_w_ih": jax.random.normal(ks[4], (3 * D_GRU_H, D_SUM_IN), jnp.float32) * sc,
        "gru_w_hh": jax.random.normal(ks[5], (3 * D_GRU_H, D_GRU_H), jnp.float32) * sc,
        "gru_b_ih": jax.random.normal(ks[6], (3 * D_GRU_H,), jnp.float32) * sc,
        "gru_b_hh": jax.random.normal(ks[7], (3 * D_GRU_H,), jnp.float32) * sc,
        "sum_w":  jax.random.normal(ks[8], (D_SUM_OUT, D_GRU_H), jnp.float32) * sc,
        "sum_b":  jax.random.normal(ks[9], (D_SUM_OUT,), jnp.float32) * sc,
        "gen_w":  jax.random.normal(ks[10], (D_GEN_OUT, D_GEN_IN), jnp.float32) * sc,
        "gen_b":  jax.random.normal(ks[11], (D_GEN_OUT,), jnp.float32) * sc,
        "tit_w1": jax.random.normal(ks[12], (D_TIT_HID, D_TIT_IN), jnp.float32) * sc,
        "tit_b1": jax.random.normal(ks[13], (D_TIT_HID,), jnp.float32) * sc,
        "tit_w2": jax.random.normal(ks[14], (D_TIT_OUT, D_TIT_HID), jnp.float32) * sc,
        "tit_b2": jax.random.normal(ks[15], (D_TIT_OUT,), jnp.float32) * sc,
        "fin_w":  jax.random.normal(
            ks[16], (OUT_SIZE, SEQ * D_SUM_OUT + D_GEN_OUT + D_TIT_OUT + D_PLAT),
            jnp.float32) * sc,
        "fin_b":  jax.random.normal(ks[17], (OUT_SIZE,), jnp.float32) * sc,
    }

    # tk_max=128 only to exercise the multi-step reduction at these small demo
    # shapes; the production default is tk_max=1024.
    out = predictor_forward(p, summaries, genres, titles, platforms, tk_max=128)
    out = jax.block_until_ready(out)
    assert out.shape == (B, OUT_SIZE)

    # --- title_encoder standalone check (bf16 weight streaming vs f32 ref) ---
    t_k = title_encoder_forward(titles, p["tit_w1"], p["tit_b1"],
                                p["tit_w2"], p["tit_b2"], tk_max=128)
    t_ref = jnp.maximum(titles @ p["tit_w1"].T + p["tit_b1"], 0.0)
    t_ref = jnp.maximum(t_ref @ p["tit_w2"].T + p["tit_b2"], 0.0)
    assert jnp.allclose(t_k, t_ref, rtol=3e-2, atol=3e-2), "title_encoder mismatch"

    # --- full predictor reference (pure JAX, f32) -----------------------------
    H = D_GRU_H
    h = jnp.zeros((B, H), jnp.float32)
    hs = []
    for tt in range(SEQ):
        gi = summaries[tt] @ p["gru_w_ih"].T + p["gru_b_ih"]
        gh = h @ p["gru_w_hh"].T + p["gru_b_hh"]
        r = jax.nn.sigmoid(gi[:, :H] + gh[:, :H])
        z = jax.nn.sigmoid(gi[:, H:2 * H] + gh[:, H:2 * H])
        n = jnp.tanh(gi[:, 2 * H:] + r * gh[:, 2 * H:])
        h = (1.0 - z) * n + z * h
        hs.append(h)
    hs = jnp.stack(hs)                                                  # (SEQ, B, 64)
    s_ref = jnp.maximum(hs @ p["sum_w"].T + p["sum_b"], 0.0).reshape(B, -1)
    g_ref = jnp.maximum(genres @ p["gen_w"].T + p["gen_b"], 0.0)
    full_ref = jnp.concatenate([s_ref, g_ref, t_ref, platforms], axis=1)
    ref = full_ref @ p["fin_w"].T + p["fin_b"]

    assert jnp.allclose(out, ref, rtol=1e-2, atol=1e-2), "predictor mismatch"
    print("KERNEL_OK")
</pallas_src>

<mosaic_0001>
module attributes {stable_mosaic.version = 11 : i64} {
  func.func @gru_linear_kernel(%arg0: i32, %arg1: memref<1x8x100xf32, #tpu.memory_space<vmem>>, %arg2: memref<3x100x64xf32, #tpu.memory_space<vmem>>, %arg3: memref<3x1x64xf32, #tpu.memory_space<vmem>>, %arg4: memref<3x64x64xf32, #tpu.memory_space<vmem>>, %arg5: memref<3x1x64xf32, #tpu.memory_space<vmem>>, %arg6: memref<64x8xf32, #tpu.memory_space<vmem>>, %arg7: memref<1x8xf32, #tpu.memory_space<vmem>>, %arg8: memref<1x8x8xf32, #tpu.memory_space<vmem>>, %arg9: memref<8x64xf32, #tpu.memory_space<vmem>>) attributes {dimension_semantics = [#tpu.dimension_semantics<arbitrary>], iteration_bounds = array<i64: 1>, scalar_prefetch = 0 : i64, scratch_operands = 1 : i64, tpu.core_type = #tpu.core_type<tc>, window_params = [{transform_indices = @transform_0, window_bounds = array<i64: 1, 8, 100>}, {pipeline_mode = #tpu.pipeline_mode<synchronous>, transform_indices = @transform_1, window_bounds = array<i64: 3, 100, 64>}, {pipeline_mode = #tpu.pipeline_mode<synchronous>, transform_indices = @transform_2, window_bounds = array<i64: 3, 1, 64>}, {pipeline_mode = #tpu.pipeline_mode<synchronous>, transform_indices = @transform_3, window_bounds = array<i64: 3, 64, 64>}, {pipeline_mode = #tpu.pipeline_mode<synchronous>, transform_indices = @transform_4, window_bounds = array<i64: 3, 1, 64>}, {pipeline_mode = #tpu.pipeline_mode<synchronous>, transform_indices = @transform_5, window_bounds = array<i64: 64, 8>}, {pipeline_mode = #tpu.pipeline_mode<synchronous>, transform_indices = @transform_6, window_bounds = array<i64: 1, 8>}, {transform_indices = @transform_7, window_bounds = array<i64: 1, 8, 8>}]} {
    %c0_i32 = arith.constant 0 : i32
    %0 = arith.cmpi eq, %arg0, %c0_i32 : i32
    %1 = arith.extui %0 : i1 to i32
    %c0_i32_0 = arith.constant 0 : i32
    %2 = arith.cmpi ne, %1, %c0_i32_0 : i32
    scf.if %2 {
      %cst_62 = arith.constant 0.000000e+00 : f32
      %83 = vector.broadcast %cst_62 : f32 to vector<8x64xf32>
      %c0_63 = arith.constant 0 : index
      %c0_64 = arith.constant 0 : index
      %84 = vector.load %arg9[%c0_63, %c0_64] : memref<8x64xf32, #tpu.memory_space<vmem>>, vector<8x64xf32>
      tpu.vector_store %arg9[%c0_63, %c0_64], %83 {strides = array<i32>} : memref<8x64xf32, #tpu.memory_space<vmem>>, vector<8x64xf32>,
    } else {
    }
    %c0 = arith.constant 0 : index
    %c0_1 = arith.constant 0 : index
    %c0_2 = arith.constant 0 : index
    %3 = vector.load %arg1[%c0, %c0_1, %c0_2] : memref<1x8x100xf32, #tpu.memory_space<vmem>>, vector<1x8x100xf32>
    %4 = vector.shape_cast %3 : vector<1x8x100xf32> to vector<8x100xf32>
    %c0_3 = arith.constant 0 : index
    %c0_4 = arith.constant 0 : index
    %5 = vector.load %arg9[%c0_3, %c0_4] : memref<8x64xf32, #tpu.memory_space<vmem>>, vector<8x64xf32>
    %c0_5 = arith.constant 0 : index
    %c0_6 = arith.constant 0 : index
    %c0_7 = arith.constant 0 : index
    %6 = vector.load %arg2[%c0_5, %c0_6, %c0_7] : memref<3x100x64xf32, #tpu.memory_space<vmem>>, vector<1x100x64xf32>
    %7 = vector.shape_cast %6 : vector<1x100x64xf32> to vector<100x64xf32>
    %cst = arith.constant dense<0.000000e+00> : vector<8x64xf32>
    %8 = tpu.matmul %4, %7, %cst {dimension_numbers = #tpu.dot_dimension_numbers<[1], [0], [0], [1], [0, 0, 1, 1], [], []>} : vector<8x100xf32>, vector<100x64xf32>, vector<8x64xf32> -> vector<8x64xf32>
    %c0_8 = arith.constant 0 : index
    %c0_9 = arith.constant 0 : index
    %c0_10 = arith.constant 0 : index
    %9 = vector.load %arg3[%c0_8, %c0_9, %c0_10] : memref<3x1x64xf32, #tpu.memory_space<vmem>>, vector<1x1x64xf32>
    %10 = vector.shape_cast %9 : vector<1x1x64xf32> to vector<1x64xf32>
    %11 = vector.broadcast %10 : vector<1x64xf32> to vector<8x64xf32>
    %12 = arith.addf %8, %11 : vector<8x64xf32>
    %c0_11 = arith.constant 0 : index
    %c0_12 = arith.constant 0 : index
    %c0_13 = arith.constant 0 : index
    %13 = vector.load %arg4[%c0_11, %c0_12, %c0_13] : memref<3x64x64xf32, #tpu.memory_space<vmem>>, vector<1x64x64xf32>
    %14 = vector.shape_cast %13 : vector<1x64x64xf32> to vector<64x64xf32>
    %cst_14 = arith.constant dense<0.000000e+00> : vector<8x64xf32>
    %15 = tpu.matmul %5, %14, %cst_14 {dimension_numbers = #tpu.dot_dimension_numbers<[1], [0], [0], [1], [0, 0, 1, 1], [], []>} : vector<8x64xf32>, vector<64x64xf32>, vector<8x64xf32> -> vector<8x64xf32>
    %c0_15 = arith.constant 0 : index
    %c0_16 = arith.constant 0 : index
    %c0_17 = arith.constant 0 : index
    %16 = vector.load %arg5[%c0_15, %c0_16, %c0_17] : memref<3x1x64xf32, #tpu.memory_space<vmem>>, vector<1x1x64xf32>
    %17 = vector.shape_cast %16 : vector<1x1x64xf32> to vector<1x64xf32>
    %18 = vector.broadcast %17 : vector<1x64xf32> to vector<8x64xf32>
    %19 = arith.addf %15, %18 : vector<8x64xf32>
    %c1 = arith.constant 1 : index
    %c0_18 = arith.constant 0 : index
    %c0_19 = arith.constant 0 : index
    %20 = vector.load %arg2[%c1, %c0_18, %c0_19] : memref<3x100x64xf32, #tpu.memory_space<vmem>>, vector<1x100x64xf32>
    %21 = vector.shape_cast %20 : vector<1x100x64xf32> to vector<100x64xf32>
    %cst_20 = arith.constant dense<0.000000e+00> : vector<8x64xf32>
    %22 = tpu.matmul %4, %21, %cst_20 {dimension_numbers = #tpu.dot_dimension_numbers<[1], [0], [0], [1], [0, 0, 1, 1], [], []>} : vector<8x100xf32>, vector<100x64xf32>, vector<8x64xf32> -> vector<8x64xf32>
    %c1_21 = arith.constant 1 : index
    %c0_22 = arith.constant 0 : index
    %c0_23 = arith.constant 0 : index
    %23 = vector.load %arg3[%c1_21, %c0_22, %c0_23] : memref<3x1x64xf32, #tpu.memory_space<vmem>>, vector<1x1x64xf32>
    %24 = vector.shape_cast %23 : vector<1x1x64xf32> to vector<1x64xf32>
    %25 = vector.broadcast %24 : vector<1x64xf32> to vector<8x64xf32>
    %26 = arith.addf %22, %25 : vector<8x64xf32>
    %c1_24 = arith.constant 1 : index
    %c0_25 = arith.constant 0 : index
    %c0_26 = arith.constant 0 : index
    %27 = vector.load %arg4[%c1_24, %c0_25, %c0_26] : memref<3x64x64xf32, #tpu.memory_space<vmem>>, vector<1x64x64xf32>
    %28 = vector.shape_cast %27 : vector<1x64x64xf32> to vector<64x64xf32>
    %cst_27 = arith.constant dense<0.000000e+00> : vector<8x64xf32>
    %29 = tpu.matmul %5, %28, %cst_27 {dimension_numbers = #tpu.dot_dimension_numbers<[1], [0], [0], [1], [0, 0, 1, 1], [], []>} : vector<8x64xf32>, vector<64x64xf32>, vector<8x64xf32> -> vector<8x64xf32>
    %c1_28 = arith.constant 1 : index
    %c0_29 = arith.constant 0 : index
    %c0_30 = arith.constant 0 : index
    %30 = vector.load %arg5[%c1_28, %c0_29, %c0_30] : memref<3x1x64xf32, #tpu.memory_space<vmem>>, vector<1x1x64xf32>
    %31 = vector.shape_cast %30 : vector<1x1x64xf32> to vector<1x64xf32>
    %32 = vector.broadcast %31 : vector<1x64xf32> to vector<8x64xf32>
    %33 = arith.addf %29, %32 : vector<8x64xf32>
    %c2 = arith.constant 2 : index
    %c0_31 = arith.constant 0 : index
    %c0_32 = arith.constant 0 : index
    %34 = vector.load %arg2[%c2, %c0_31, %c0_32] : memref<3x100x64xf32, #tpu.memory_space<vmem>>, vector<1x100x64xf32>
    %35 = vector.shape_cast %34 : vector<1x100x64xf32> to vector<100x64xf32>
    %cst_33 = arith.constant dense<0.000000e+00> : vector<8x64xf32>
    %36 = tpu.matmul %4, %35, %cst_33 {dimension_numbers = #tpu.dot_dimension_numbers<[1], [0], [0], [1], [0, 0, 1, 1], [], []>} : vector<8x100xf32>, vector<100x64xf32>, vector<8x64xf32> -> vector<8x64xf32>
    %c2_34 = arith.constant 2 : index
    %c0_35 = arith.constant 0 : index
    %c0_36 = arith.constant 0 : index
    %37 = vector.load %arg3[%c2_34, %c0_35, %c0_36] : memref<3x1x64xf32, #tpu.memory_space<vmem>>, vector<1x1x64xf32>
    %38 = vector.shape_cast %37 : vector<1x1x64xf32> to vector<1x64xf32>
    %39 = vector.broadcast %38 : vector<1x64xf32> to vector<8x64xf32>
    %40 = arith.addf %36, %39 : vector<8x64xf32>
    %c2_37 = arith.constant 2 : index
    %c0_38 = arith.constant 0 : index
    %c0_39 = arith.constant 0 : index
    %41 = vector.load %arg4[%c2_37, %c0_38, %c0_39] : memref<3x64x64xf32, #tpu.memory_space<vmem>>, vector<1x64x64xf32>
    %42 = vector.shape_cast %41 : vector<1x64x64xf32> to vector<64x64xf32>
    %cst_40 = arith.constant dense<0.000000e+00> : vector<8x64xf32>
    %43 = tpu.matmul %5, %42, %cst_40 {dimension_numbers = #tpu.dot_dimension_numbers<[1], [0], [0], [1], [0, 0, 1, 1], [], []>} : vector<8x64xf32>, vector<64x64xf32>, vector<8x64xf32> -> vector<8x64xf32>
    %c2_41 = arith.constant 2 : index
    %c0_42 = arith.constant 0 : index
    %c0_43 = arith.constant 0 : index
    %44 = vector.load %arg5[%c2_41, %c0_42, %c0_43] : memref<3x1x64xf32, #tpu.memory_space<vmem>>, vector<1x1x64xf32>
    %45 = vector.shape_cast %44 : vector<1x1x64xf32> to vector<1x64xf32>
    %46 = vector.broadcast %45 : vector<1x64xf32> to vector<8x64xf32>
    %47 = arith.addf %43, %46 : vector<8x64xf32>
    %48 = arith.addf %12, %19 : vector<8x64xf32>
    %cst_44 = arith.constant 0.000000e+00 : f32
    %49 = vector.broadcast %cst_44 : f32 to vector<8x64xf32>
    %50 = arith.subf %49, %48 : vector<8x64xf32>
    %51 = math.exp %50 : vector<8x64xf32>
    %cst_45 = arith.constant 1.000000e+00 : f32
    %52 = vector.broadcast %cst_45 : f32 to vector<8x64xf32>
    %53 = arith.addf %52, %51 : vector<8x64xf32>
    %cst_46 = arith.constant 1.000000e+00 : f32
    %54 = vector.broadcast %cst_46 : f32 to vector<8x64xf32>
    %55 = arith.divf %54, %53 : vector<8x64xf32>
    %56 = arith.addf %26, %33 : vector<8x64xf32>
    %cst_47 = arith.constant 0.000000e+00 : f32
    %57 = vector.broadcast %cst_47 : f32 to vector<8x64xf32>
    %58 = arith.subf %57, %56 : vector<8x64xf32>
    %59 = math.exp %58 : vector<8x64xf32>
    %cst_48 = arith.constant 1.000000e+00 : f32
    %60 = vector.broadcast %cst_48 : f32 to vector<8x64xf32>
    %61 = arith.addf %60, %59 : vector<8x64xf32>
    %cst_49 = arith.constant 1.000000e+00 : f32
    %62 = vector.broadcast %cst_49 : f32 to vector<8x64xf32>
    %63 = arith.divf %62, %61 : vector<8x64xf32>
    %64 = arith.mulf %55, %47 : vector<8x64xf32>
    %65 = arith.addf %40, %64 : vector<8x64xf32>
    %66 = math.tanh %65 : vector<8x64xf32>
    %cst_50 = arith.constant 1.000000e+00 : f32
    %67 = vector.broadcast %cst_50 : f32 to vector<8x64xf32>
    %68 = arith.subf %67, %63 : vector<8x64xf32>
    %69 = arith.mulf %68, %66 : vector<8x64xf32>
    %70 = arith.mulf %63, %5 : vector<8x64xf32>
    %71 = arith.addf %69, %70 : vector<8x64xf32>
    %c0_51 = arith.constant 0 : index
    %c0_52 = arith.constant 0 : index
    %72 = vector.load %arg9[%c0_51, %c0_52] : memref<8x64xf32, #tpu.memory_space<vmem>>, vector<8x64xf32>
    tpu.vector_store %arg9[%c0_51, %c0_52], %71 {strides = array<i32>} : memref<8x64xf32, #tpu.memory_space<vmem>>, vector<8x64xf32>,
    %c0_53 = arith.constant 0 : index
    %c0_54 = arith.constant 0 : index
    %73 = vector.load %arg6[%c0_53, %c0_54] : memref<64x8xf32, #tpu.memory_space<vmem>>, vector<64x8xf32>
    %cst_55 = arith.constant dense<0.000000e+00> : vector<8x8xf32>
    %74 = tpu.matmul %71, %73, %cst_55 {dimension_numbers = #tpu.dot_dimension_numbers<[1], [0], [0], [1], [0, 0, 1, 1], [], []>} : vector<8x64xf32>, vector<64x8xf32>, vector<8x8xf32> -> vector<8x8xf32>
    %c0_56 = arith.constant 0 : index
    %c0_57 = arith.constant 0 : index
    %75 = vector.load %arg7[%c0_56, %c0_57] : memref<1x8xf32, #tpu.memory_space<vmem>>, vector<1x8xf32>
    %76 = vector.broadcast %75 : vector<1x8xf32> to vector<8x8xf32>
    %77 = arith.addf %74, %76 : vector<8x8xf32>
    %cst_58 = arith.constant 0.000000e+00 : f32
    %78 = vector.broadcast %cst_58 : f32 to vector<8x8xf32>
    %79 = arith.maximumf %77, %78 : vector<8x8xf32>
    %c0_59 = arith.constant 0 : index
    %c0_60 = arith.constant 0 : index
    %c0_61 = arith.constant 0 : index
    %80 = vector.load %arg8[%c0_59, %c0_60, %c0_61] : memref<1x8x8xf32, #tpu.memory_space<vmem>>, vector<1x8x8xf32>
    %81 = vector.shape_cast %80 : vector<1x8x8xf32> to vector<8x8xf32>
    %82 = vector.shape_cast %79 : vector<8x8xf32> to vector<1x8x8xf32>
    tpu.vector_store %arg8[%c0_59, %c0_60, %c0_61], %82 {strides = array<i32>} : memref<1x8x8xf32, #tpu.memory_space<vmem>>, vector<1x8x8xf32>,
    return
  }
  func.func @transform_0(%arg0: i32) -> (i32, i32, i32) {
    %c0_i32 = arith.constant 0 : i32
    %c0_i32_0 = arith.constant 0 : i32
    %c0_i32_1 = arith.constant 0 : i32
    return %arg0, %c0_i32, %c0_i32_0 : i32, i32, i32
  }
  func.func @transform_1(%arg0: i32) -> (i32, i32, i32) {
    %c0_i32 = arith.constant 0 : i32
    %c0_i32_0 = arith.constant 0 : i32
    %c0_i32_1 = arith.constant 0 : i32
    %c0_i32_2 = arith.constant 0 : i32
    return %c0_i32, %c0_i32_0, %c0_i32_1 : i32, i32, i32
  }
  func.func @transform_2(%arg0: i32) -> (i32, i32, i32) {
    %c0_i32 = arith.constant 0 : i32
    %c0_i32_0 = arith.constant 0 : i32
    %c0_i32_1 = arith.constant 0 : i32
    %c0_i32_2 = arith.constant 0 : i32
    return %c0_i32, %c0_i32_0, %c0_i32_1 : i32, i32, i32
  }
  func.func @transform_3(%arg0: i32) -> (i32, i32, i32) {
    %c0_i32 = arith.constant 0 : i32
    %c0_i32_0 = arith.constant 0 : i32
    %c0_i32_1 = arith.constant 0 : i32
    %c0_i32_2 = arith.constant 0 : i32
    return %c0_i32, %c0_i32_0, %c0_i32_1 : i32, i32, i32
  }
  func.func @transform_4(%arg0: i32) -> (i32, i32, i32) {
    %c0_i32 = arith.constant 0 : i32
    %c0_i32_0 = arith.constant 0 : i32
    %c0_i32_1 = arith.constant 0 : i32
    %c0_i32_2 = arith.constant 0 : i32
    return %c0_i32, %c0_i32_0, %c0_i32_1 : i32, i32, i32
  }
  func.func @transform_5(%arg0: i32) -> (i32, i32) {
    %c0_i32 = arith.constant 0 : i32
    %c0_i32_0 = arith.constant 0 : i32
    %c0_i32_1 = arith.constant 0 : i32
    return %c0_i32, %c0_i32_0 : i32, i32
  }
  func.func @transform_6(%arg0: i32) -> (i32, i32) {
    %c0_i32 = arith.constant 0 : i32
    %c0_i32_0 = arith.constant 0 : i32
    %c0_i32_1 = arith.constant 0 : i32
    return %c0_i32, %c0_i32_0 : i32, i32
  }
  func.func @transform_7(%arg0: i32) -> (i32, i32, i32) {
    %c0_i32 = arith.constant 0 : i32
    %c0_i32_0 = arith.constant 0 : i32
    %c0_i32_1 = arith.constant 0 : i32
    return %arg0, %c0_i32, %c0_i32_0 : i32, i32, i32
  }
}

</mosaic_0001>

<bundles_post_ra>
// kernel: tpu_custom_call.1
= control target key start
LH: loop header
LB: loop body
LE: loop exit
PB: predicated region body
PF: predicated region fallthrough
CT: control target
= control target key end

     0   :  { %vm56_vm0 = vcmask 1043456   ;;  %vm31_vm1 = vcmask 523264   ;;  %v471_v6 = vmov 0.0   ;;  %vm52_vm2 = vcmask 818176   ;;  %s771_s0 = inlined_call_operand.vmem [shape: f32[1,8,100], index: 0, kind: input, shape index: {}]   ;;  %s772_s1 = inlined_call_operand.vmem [shape: f32[3,100,64], index: 1, kind: input, shape index: {}]   ;;  %s773_s2 = inlined_call_operand.vmem [shape: f32[3,1,64], index: 2, kind: input, shape index: {}]   ;;  %s774_s3 = inlined_call_operand.vmem [shape: f32[3,64,64], index: 3, kind: input, shape index: {}]   ;;  %s775_s4 = inlined_call_operand.vmem [shape: f32[3,1,64], index: 4, kind: input, shape index: {}]   ;;  %s776_s5 = inlined_call_operand.vmem [shape: f32[64,8], index: 5, kind: input, shape index: {}]   ;;  %s777_s6 = inlined_call_operand.vmem [shape: f32[1,8], index: 6, kind: input, shape index: {}]   ;;  %s778_s7 = inlined_call_operand.hbm [shape: f32[1,8,8], index: 7, kind: output, shape index: {}]  }
   0x1   :  { %v47_v0 = vld [vmem:[%s772_s1 + $0x60] sm:$0xf]  ;;  %v385_v1 = vld [vmem:[%s772_s1 + $0xc8] sm:$0xf]  ;;  %v46_v2 = vld [vmem:[%s772_s1 + $0x58] sm:$0xff]  ;;  %32 = vst.msk [vmem:[#allocation2] sm:$0xff] %vm31_vm1, %v471_v6 }
   0x2   :  { %370 = vmatpush.msk.msra.mxu0 %vm56_vm0, %v47_v0  ;;  %387 = vmatpush.msk.msra.mxu2 %vm56_vm0, %v385_v1  ;;  %v384_v3 = vld [vmem:[%s772_s1 + $0xc0] sm:$0xff]  ;;  %v45_v4 = vld [vmem:[%s772_s1 + $0x50] sm:$0xff]  ;;  %v383_v5 = vld [vmem:[%s772_s1 + $0xb8] sm:$0xff] }
   0x3   :  { %v87_v7 = vld [vmem:[%s774_s3 + $0x38] sm:$0xff]  ;;  %v44_v8 = vld [vmem:[%s772_s1 + $0x48] sm:$0xff]  ;;  %v382_v9 = vld [vmem:[%s772_s1 + $0xb0] sm:$0xff] }
   0x4   :  { %64 = vmatpush.msra.mxu0 %v46_v2  ;;  %142 = vmatpush.msra.mxu2 %v384_v3  ;;  %v396_v10 = vld [vmem:[%s774_s3 + $0x78] sm:$0xff]  ;;  %v86_v11 = vld [vmem:[%s774_s3 + $0x30] sm:$0xff]  ;;  %v43_v13 = vld [vmem:[%s772_s1 + $0x40] sm:$0xff] }
   0x5   :  { %104 = vmatpush.msra.mxu1 %v87_v7  ;;  %v395_v12 = vld [vmem:[%s774_s3 + $0x70] sm:$0xff]  ;;  %v381_v14 = vld [vmem:[%s772_s1 + $0xa8] sm:$0xff]  ;;  %180 = vmatpush.msra.mxu3 %v396_v10  ;;  %v84_v17 = vld [vmem:[%s774_s3 + $0x20] sm:$0xff] }
   0x6   :  { %65 = vmatpush.msra.mxu0 %v45_v4  ;;  %143 = vmatpush.msra.mxu2 %v383_v5  ;;  %v85_v15 = vld [vmem:[%s774_s3 + $0x28] sm:$0xff]  ;;  %v42_v18 = vld [vmem:[%s772_s1 + $0x38] sm:$0xff]  ;;  %v380_v19 = vld [vmem:[%s772_s1 + $0xa0] sm:$0xff] }
   0x7   :  { %105 = vmatpush.msra.mxu1 %v86_v11  ;;  %v394_v16 = vld [vmem:[%s774_s3 + $0x68] sm:$0xff]  ;;  %181 = vmatpush.msra.mxu3 %v395_v12  ;;  %v393_v20 = vld [vmem:[%s774_s3 + $0x60] sm:$0xff]  ;;  %v83_v21 = vld [vmem:[%s774_s3 + $0x18] sm:$0xff] }
   0x8   :  { %66 = vmatpush.msra.mxu0 %v44_v8  ;;  %144 = vmatpush.msra.mxu2 %v382_v9  ;;  %v41_v22 = vld [vmem:[%s772_s1 + $0x30] sm:$0xff]  ;;  %v379_v23 = vld [vmem:[%s772_s1 + $0x98] sm:$0xff]  ;;  %v40_v26 = vld [vmem:[%s772_s1 + $0x28] sm:$0xff] }
   0x9   :  { %106 = vmatpush.msra.mxu1 %v85_v15  ;;  %182 = vmatpush.msra.mxu3 %v394_v16  ;;  %v392_v24 = vld [vmem:[%s774_s3 + $0x58] sm:$0xff]  ;;  %v82_v25 = vld [vmem:[%s774_s3 + $0x10] sm:$0xff]  ;;  %v81_v29 = vld [vmem:[%s774_s3 + $0x8] sm:$0xff] }
   0xa   :  { %67 = vmatpush.msra.mxu0 %v43_v13  ;;  %145 = vmatpush.msra.mxu2 %v381_v14  ;;  %v378_v27 = vld [vmem:[%s772_s1 + $0x90] sm:$0xff]  ;;  %v39_v30 = vld [vmem:[%s772_s1 + $0x20] sm:$0xff]  ;;  %v377_v31 = vld [vmem:[%s772_s1 + $0x88] sm:$0xff] }
   0xb   :  { %107 = vmatpush.msra.mxu1 %v84_v17  ;;  %183 = vmatpush.msra.mxu3 %v393_v20  ;;  %v391_v28 = vld [vmem:[%s774_s3 + $0x50] sm:$0xff]  ;;  %v390_v32 = vld [vmem:[%s774_s3 + $0x48] sm:$0xff]  ;;  %v80_v33 = vld [vmem:[%s774_s3] sm:$0xff] }
   0xc   :  { %68 = vmatpush.msra.mxu0 %v42_v18  ;;  %146 = vmatpush.msra.mxu2 %v380_v19  ;;  %v38_v34 = vld [vmem:[%s772_s1 + $0x18] sm:$0xff]  ;;  %v376_v35 = vld [vmem:[%s772_s1 + $0x80] sm:$0xff]  ;;  %v37_v38 = vld [vmem:[%s772_s1 + $0x10] sm:$0xff] }
   0xd   :  { %108 = vmatpush.msra.mxu1 %v83_v21  ;;  %184 = vmatpush.msra.mxu3 %v392_v24  ;;  %v389_v36 = vld [vmem:[%s774_s3 + $0x40] sm:$0xff]  ;;  %v375_v39 = vld [vmem:[%s772_s1 + $0x78] sm:$0xff]  ;;  %v36_v40 = vld [vmem:[%s772_s1 + $0x8] sm:$0xff] }
   0xe   :  { %69 = vmatpush.msra.mxu0 %v41_v22  ;;  %147 = vmatpush.msra.mxu2 %v379_v23  ;;  %v624_v37 = vld [vmem:[#allocation2] sm:$0xff]  ;;  %v411_v41 = vld [vmem:[%s772_s1 + $0x130] sm:$0xf]  ;;  %v373_v44 = vld [vmem:[%s772_s1 + $0x68] sm:$0xff] }
   0xf   :  { %109 = vmatpush.msra.mxu1 %v82_v25  ;;  %185 = vmatpush.msra.mxu3 %v391_v28  ;;  %v374_v42 = vld [vmem:[%s772_s1 + $0x70] sm:$0xff]  ;;  %v35_v43 = vld [vmem:[%s772_s1] sm:$0xff]  ;;  %v410_v46 = vld [vmem:[%s772_s1 + $0x128] sm:$0xff] }
  0x10   :  { %70 = vmatpush.msra.mxu0 %v40_v26  ;;  %148 = vmatpush.msra.mxu2 %v378_v27  ;;  %v33_v45 = vld [vmem:[%s771_s0] sm:$0xff]  ;;  %v422_v47 = vld [vmem:[%s774_s3 + $0xb8] sm:$0xff]  ;;  %v421_v49 = vld [vmem:[%s774_s3 + $0xb0] sm:$0xff] }
  0x11   :  { %110 = vmatpush.msra.mxu1 %v81_v29  ;;  %186 = vmatpush.msra.mxu3 %v390_v32  ;;  %v409_v48 = vld [vmem:[%s772_s1 + $0x120] sm:$0xff] }
  0x12   :  { %71 = vmatpush.msra.mxu0 %v39_v30  ;;  %149 = vmatpush.msra.mxu2 %v377_v31 }
  0x13   :  { %111 = vmatpush.msra.mxu1 %v80_v33  ;;  %187 = vmatpush.msra.mxu3 %v389_v36 }
  0x14   :  { %72 = vmatpush.msra.mxu0 %v38_v34  ;;  %150 = vmatpush.msra.mxu2 %v376_v35 }
  0x15   :  { %372 = vmatmul.msk.f32.vlgmr.msra.gmra.mxu1 %vm31_vm1, %v624_v37  ;;  %398 = vmatmul.msk.f32.vlgmr.msra.gmra.mxu3 %vm31_vm1, %v624_v37 }
  0x16   :  { %73 = vmatpush.msra.mxu0 %v37_v38  ;;  %151 = vmatpush.msra.mxu2 %v375_v39 }
  0x17   :  { %413 = vmatpush.msk.msrb.mxu1 %vm56_vm0, %v411_v41  ;;  %256 = vmatpush.msrb.mxu3 %v422_v47 }
  0x18   :  { %74 = vmatpush.msra.mxu0 %v36_v40  ;;  %152 = vmatpush.msra.mxu2 %v374_v42 }
  0x19   :  { %218 = vmatpush.msrb.mxu1 %v410_v46 }
  0x1a   :  { %12 = vsyncpa [#allocation4], 0  ;;  %75 = vmatpush.msra.mxu0 %v35_v43  ;;  %153 = vmatpush.msra.mxu2 %v373_v44  ;;  %v408_v50 = vld [vmem:[%s772_s1 + $0x118] sm:$0xff]  ;;  %v420_v51 = vld [vmem:[%s774_s3 + $0xa8] sm:$0xff]  ;;  %s472_s12 = smov [#allocation3]   ;;  %s361_s16 = sshll.u32 %s778_s7, 4  ;;  %s362_s16 = int_to_ptr.hbm [resolvable:$true] %s361_s16 }
  0x1b   :  { %371 = vmatmul.msk.f32.vlgmr.msra.gmra.mxu0 %vm52_vm2, %v33_v45  ;;  %388 = vmatmul.msk.f32.vlgmr.msra.gmra.mxu2 %vm52_vm2, %v33_v45  ;;  %v407_v52 = vld [vmem:[%s772_s1 + $0x110] sm:$0xff]  ;;  %v419_v53 = vld [vmem:[%s774_s3 + $0xa0] sm:$0xff]  ;;  %v406_v54 = vld [vmem:[%s772_s1 + $0x108] sm:$0xff]  ;;  %s359_s13 = sshll.u32 %s472_s12, 4  ;;  %vm352_vm11 = vcmask 64512   ;;  %s360_s13 = int_to_ptr.vmem [resolvable:$true] %s359_s13 }
  0x1c   :  { %219 = vmatpush.msrb.mxu1 %v409_v48  ;;  %257 = vmatpush.msrb.mxu3 %v421_v49  ;;  %v418_v55 = vld [vmem:[%s774_s3 + $0x98] sm:$0xff]  ;;  %v405_v56 = vld [vmem:[%s772_s1 + $0x100] sm:$0xff]  ;;  %v417_v57 = vld [vmem:[%s774_s3 + $0x90] sm:$0xff] }
  0x1d   :  { %v404_v58 = vld [vmem:[%s772_s1 + $0xf8] sm:$0xff]  ;;  %v416_v59 = vld [vmem:[%s774_s3 + $0x88] sm:$0xff]  ;;  %v403_v60 = vld [vmem:[%s772_s1 + $0xf0] sm:$0xff] }
  0x1e   :  { %220 = vmatpush.msrb.mxu1 %v408_v50  ;;  %258 = vmatpush.msrb.mxu3 %v420_v51  ;;  %v415_v61 = vld [vmem:[%s774_s3 + $0x80] sm:$0xff]  ;;  %v402_v62 = vld [vmem:[%s772_s1 + $0xe8] sm:$0xff]  ;;  %v400_v0 = vld [vmem:[%s772_s1 + $0xd8] sm:$0xff] }
  0x1f   :  { %v401_v63 = vld [vmem:[%s772_s1 + $0xe0] sm:$0xff]  ;;  %v399_v1 = vld [vmem:[%s772_s1 + $0xd0] sm:$0xff]  ;;  %v323_v10 = vld [vmem:[%s776_s5 + $0x38] sm:$0xff] }
  0x20   :  { %221 = vmatpush.msrb.mxu1 %v407_v52  ;;  %259 = vmatpush.msrb.mxu3 %v419_v53  ;;  %v429_v2 = vld [vmem:[%s775_s4] ss:$0 sm:$0xff]  ;;  %v431_v8 = vld [vmem:[%s775_s4 + $0x1] ss:$0 sm:$0xff]  ;;  %v322_v13 = vld [vmem:[%s776_s5 + $0x30] sm:$0xff] }
  0x21   :  { %v428_v4 = vld [vmem:[%s773_s2] ss:$0 sm:$0xff]  ;;  %v430_v12 = vld [vmem:[%s773_s2 + $0x1] ss:$0 sm:$0xff]  ;;  %339 = vmatpush.msrb.mxu0 %v323_v10  ;;  %v321_v17 = vld [vmem:[%s776_s5 + $0x28] sm:$0xff] }
  0x22   :  { %222 = vmatpush.msrb.mxu1 %v406_v54  ;;  %260 = vmatpush.msrb.mxu3 %v418_v55  ;;  %v320_v20 = vld [vmem:[%s776_s5 + $0x20] sm:$0xff]  ;;  %v319_v21 = vld [vmem:[%s776_s5 + $0x18] sm:$0xff]  ;;  %v318_v23 = vld [vmem:[%s776_s5 + $0x10] sm:$0xff] }
  0x23   :  { %340 = vmatpush.msrb.mxu0 %v322_v13  ;;  %v317_v25 = vld [vmem:[%s776_s5 + $0x8] sm:$0xff]  ;;  %v316_v27 = vld [vmem:[%s776_s5] sm:$0xff] }
  0x24   :  { %223 = vmatpush.msrb.mxu1 %v405_v56  ;;  %261 = vmatpush.msrb.mxu3 %v417_v57  ;;  %v432_v34 = vld [vmem:[%s775_s4 + $0x2] ss:$0 sm:$0xff] }
  0x25   :  { %341 = vmatpush.msrb.mxu0 %v321_v17  ;;  %v433_v41 = vld [vmem:[%s773_s2 + $0x2] ss:$0 sm:$0xff] }
  0x26   :  { %224 = vmatpush.msrb.mxu1 %v404_v58  ;;  %262 = vmatpush.msrb.mxu3 %v416_v59 }
  0x27   :  { %342 = vmatpush.msrb.mxu0 %v320_v20 }
  0x28   :  { %225 = vmatpush.msrb.mxu1 %v403_v60  ;;  %263 = vmatpush.msrb.mxu3 %v415_v61 }
  0x29   :  { %424 = vmatmul.msk.f32.vlgmr.msrb.gmra.mxu3 %vm31_vm1, %v624_v37  ;;  %343 = vmatpush.msrb.mxu0 %v319_v21 }
  0x2a   :  { %226 = vmatpush.msrb.mxu1 %v402_v62 }
  0x2b   :  { %344 = vmatpush.msrb.mxu0 %v318_v23 }
  0x2c   :  { %227 = vmatpush.msrb.mxu1 %v401_v63 }
  0x2d   :  { %345 = vmatpush.msrb.mxu0 %v317_v25 }
  0x2e   :  { %228 = vmatpush.msrb.mxu1 %v400_v0 }
  0x2f   :  { %346 = vmatpush.msrb.mxu0 %v316_v27 }
  0x30   :  { %229 = vmatpush.msrb.mxu1 %v399_v1 }
  0x31   :  { %414 = vmatmul.msk.f32.vlgmr.msrb.gmra.mxu1 %vm52_vm2, %v33_v45 }
  0x92   :  { %v113_v3 = vpop.f32.mrf.mxu1 }
  0x93   :  { %v114_v5 = vadd.f32 %v429_v2, %v113_v3  ;;  %v434_v2 = vld [vmem:[%s777_s6] ss:$0 sm:$0xff] }
  0x98   :  { %v77_v6 = vpop.f32.mrf.mxu0  ;;  %v189_v9 = vpop.f32.mrf.mxu3 }
  0x99   :  { %v78_v7 = vadd.f32 %v428_v4, %v77_v6  ;;  %v190_v15 = vadd.f32 %v431_v8, %v189_v9 }
  0x9b   :  { %v268_v11 = vadd.f32 %v114_v5, %v78_v7 }
  0x9d   :  { %v269_v14 = vsub.f32 0.0, %v268_v11 }
  0x9e   :  { %v155_v16 = vpop.f32.mrf.mxu2 }
  0x9f   :  { %v270_v18 = vmul.f32 1.442695, %v269_v14  ;;  %v156_v19 = vadd.f32 %v430_v12, %v155_v16 }
  0xa1   :  { %435 = vpow2.f32 %v270_v18  ;;  %v288_v22 = vadd.f32 %v190_v15, %v156_v19 }
  0xa3   :  { %v289_v24 = vsub.f32 0.0, %v288_v22 }
  0xa5   :  { %v290_v26 = vmul.f32 1.442695, %v289_v24 }
  0xa7   :  { %v436_v28 = vpop.eup %435  ;;  %437 = vpow2.f32 %v290_v26 }
  0xa8   :  { %v272_v29 = vadd.f32 1.0, %v436_v28 }
  0xaa   :  { %439 = vrcp.f32 %v272_v29  ;;  %v284_v38 = vand.u32 2147483648, %v272_v29  ;;  %v282_v40 = vand.u32 2147483647, %v272_v29  ;;  %vm278_vm4 = vweird.f32 %v272_v29 }
  0xac   :  { %v265_v36 = vpop.f32.mrf.mxu3  ;;  %v285_v47 = vor.u32 1.1754944e-38, %v284_v38  ;;  %vm283_vm6 = vcmp.eq.f32.partialorder %v282_v40, 8.507059e+37 }
  0xad   :  { %v438_v30 = vpop.eup %437  ;;  %v266_v45 = vadd.f32 %v432_v34, %v265_v36 }
  0xae   :  { %v292_v31 = vadd.f32 1.0, %v438_v30  ;;  %v231_v43 = vpop.f32.mrf.mxu1 }
  0xaf   :  { %v232_v50 = vadd.f32 %v433_v41, %v231_v43 }
  0xb0   :  { %v440_v32 = vpop.eup %439  ;;  %441 = vrcp.f32 %v292_v31  ;;  %v304_v54 = vand.u32 2147483648, %v292_v31  ;;  %v302_v55 = vand.u32 2147483647, %v292_v31  ;;  %vm298_vm8 = vweird.f32 %v292_v31 }
  0xb1   :  { %v274_v33 = vmul.f32 %v440_v32, %v272_v29  ;;  %vm279_vm3 = vweird.f32 %v440_v32 }
  0xb2   :  { %vm280_vm5 = vmor %vm278_vm4, %vm279_vm3  ;;  %v305_v59 = vor.u32 1.1754944e-38, %v304_v54  ;;  %vm303_vm10 = vcmp.eq.f32.partialorder %v302_v55, 8.507059e+37 }
  0xb3   :  { %v275_v35 = vsub.f32 1.0, %v274_v33 }
  0xb5   :  { %v276_v39 = vmul.f32 %v440_v32, %v275_v35 }
  0xb6   :  { %v442_v42 = vpop.eup %441 }
  0xb7   :  { %v294_v44 = vmul.f32 %v442_v42, %v292_v31  ;;  %v277_v46 = vadd.f32 %v440_v32, %v276_v39  ;;  %vm299_vm7 = vweird.f32 %v442_v42 }
  0xb8   :  { %vm300_vm9 = vmor %vm298_vm8, %vm299_vm7 }
  0xb9   :  { %v295_v48 = vsub.f32 1.0, %v294_v44  ;;  %v281_v49 = vsel %vm280_vm5, %v440_v32, %v277_v46 }
  0xba   :  { %v286_v51 = vsel %vm283_vm6, %v285_v47, %v281_v49 }
  0xbb   :  { %v308_v52 = vmul.f32 %v286_v51, %v266_v45  ;;  %v296_v53 = vmul.f32 %v442_v42, %v295_v48 }
  0xbd   :  { %v309_v56 = vadd.f32 %v308_v52, %v232_v50  ;;  %v297_v57 = vadd.f32 %v442_v42, %v296_v53 }
  0xbf   :  { %443 = vtanh.f32 %v309_v56  ;;  %v301_v58 = vsel %vm300_vm9, %v442_v42, %v297_v57 }
  0xc0   :  { %v306_v60 = vsel %vm303_vm10, %v305_v59, %v301_v58 }
  0xc1   :  { %v311_v61 = vsub.f32 1.0, %v306_v60  ;;  %v313_v0 = vmul.f32 %v306_v60, %v624_v37 }
  0xc5   :  { %v444_v62 = vpop.eup %443 }
  0xc6   :  { %v312_v63 = vmul.f32 %v444_v62, %v311_v61 }
  0xc8   :  { %v314_v1 = vadd.f32 %v313_v0, %v312_v63 }
  0xca   :  { %315 = vst.msk [vmem:[#allocation2] sm:$0xff] %vm31_vm1, %v314_v1  ;;  %425 = vmatmul.msk.f32.vlgmr.msrb.gmra.mxu0 %vm31_vm1, %v314_v1 }
 0x147   :  { %v348_v3 = vpop.f32.mrf.mxu0 }
 0x148   :  { %v349_v4 = vadd.f32 %v434_v2, %v348_v3 }
 0x14a   :  { %v351_v5 = vmax.f32 %v349_v4, 0.0 }
 0x14c   :  { %353 = vst.msk [vmem:[#allocation3] sm:$0xff] %vm352_vm11, %v351_v5 }
 0x14d   :  { %364 = dma.vmem_to_hbm [thread:$0]  %s360_s13, 128, %s362_s16, [#allocation4]  }
 0x14e   :  { %469 = dma.done.wait [#allocation4], 128  }
 0x14f   :  { %470 = vsyncadd [#allocation4], 4294967168 }
 0x150   :  { %369 = vsyncpa [#allocation4], 1 }

</bundles_post_ra>
